<compile_context>
chip_gen: v7x
topology: tpu7x:2x2x1
jax: 0.10.0
libtpu: 0.0.40
codegen_flags: <defaults>
</compile_context>

<pallas_src>
import jax
import jax.numpy as jnp
from jax import lax
from jax.experimental import pallas as pl
from jax.experimental.pallas import tpu as pltpu


_LANE = 128
_SUBLANE = 8
_CHUNK = 256          # in-kernel sub-chunk of the batch tile (vreg-friendly)


def _round_up(n, m):
    return ((n + m - 1) // m) * m


def _cdiv(a, b):
    return (a + b - 1) // b


def _apply_act(h, act):
    if act is None:
        return h
    if act == "relu":
        return jnp.maximum(h, 0.0)
    if act == "tanh":
        return jnp.tanh(h)
    raise ValueError(f"unsupported activation: {act}")


def _pick_batch_tiling(batch, max_batch_tile, lane_dense_out):
    """Choose (batch_tile tb, padded batch, in-kernel chunk)."""
    min_align = _LANE if lane_dense_out else _SUBLANE
    bp0 = _round_up(max(batch, 1), min_align)
    cap = max(_round_up(max_batch_tile, _CHUNK), _CHUNK)
    if bp0 >= 2 * _CHUNK:
        # >=2 (even) grid steps so the ("parallel",) axis shards across both
        # v7x TensorCores; tiles are multiples of _CHUNK for clean sub-chunking.
        n_steps = max(_cdiv(bp0, cap), 2)
        if n_steps % 2:
            n_steps += 1
        tb = _round_up(_cdiv(bp0, n_steps), _CHUNK)
        n_steps = _cdiv(bp0, tb)
        if n_steps % 2:
            n_steps += 1
        batch_padded = tb * n_steps
    else:
        tb = bp0
        batch_padded = bp0
    if tb % _CHUNK == 0:
        chunk = _CHUNK
    elif tb % _LANE == 0:
        chunk = _LANE
    else:
        chunk = tb
    return tb, batch_padded, chunk


def _make_fused_mlp_kernel(num_layers, activations, chunk, n_chunks,
                           lane_dense_out):
    """out = L_n(...act_1(L_1(x))...), all intermediates resident in vregs.

    refs = (w1, b1, ..., wN, bN, o_ref).  Intermediate weights are (in, out);
    when lane_dense_out, the LAST weight keeps (out_rows, in) layout and the
    result is written transposed (out_rows, tb) — batch on lanes."""

    # Transposed-rhs matmul (contract both operands on their last dim),
    # exactly the q·k^T pattern used by the Pallas flash-attention kernel.
    nt_dims = (((1,), (1,)), ((), ()))

    def kernel(x_ref, *refs):
        o_ref = refs[-1]
        p = refs[:-1]

        def body(c, carry):
            r0 = pl.multiple_of(c * chunk, chunk)
            h = x_ref[pl.ds(r0, chunk), :]                    # (chunk, in)
            for i in range(num_layers - 1):
                w = p[2 * i][...]                             # (in_i, out_i)
                b = p[2 * i + 1][...]                         # (1, out_i)
                h = jnp.dot(h, w, preferred_element_type=jnp.float32) + b
                h = _apply_act(h, activations[i] if i < len(activations)
                               else None)
            last = num_layers - 1
            w = p[2 * last][...]
            b = p[2 * last + 1][...]
            act = activations[last] if last < len(activations) else None
            if lane_dense_out:
                # w: (out_rows, in), b: (out_rows, 1) -> o: (out_rows, chunk)
                o = lax.dot_general(w, h, nt_dims,
                                    preferred_element_type=jnp.float32) + b
                o = _apply_act(o, act)
                o_ref[:, pl.ds(r0, chunk)] = o.astype(o_ref.dtype)
            else:
                o = jnp.dot(h, w, preferred_element_type=jnp.float32) + b
                o = _apply_act(o, act)
                o_ref[pl.ds(r0, chunk), :] = o.astype(o_ref.dtype)
            return carry

        lax.fori_loop(0, n_chunks, body, None, unroll=True)

    return kernel


def make_net_forward(params, activation_functions, *, max_batch_tile=4096):
    """Hoist all parameter prep (transposes / pads) out of the per-call path
    and return a jitted forward(x) running the MLP as ONE fused pallas_call.

    params: list of (W, b) in PyTorch layout — W: (out, in), b: (out,)."""
    num_layers = len(params)
    in_features = params[0][0].shape[1]
    out_features = params[-1][0].shape[0]
    activations = tuple(activation_functions)

    # Lane-dense writeback: emit the result transposed unless out_features is
    # already a multiple of 128.
    lane_dense_out = (out_features % _LANE) != 0
    out_rows = _round_up(out_features, _SUBLANE) if lane_dense_out else out_features

    # ---- one-time parameter prep ----
    ops = []
    for li, (w, b) in enumerate(params):
        w = jnp.asarray(w, jnp.float32)
        b = jnp.asarray(b, jnp.float32)
        if lane_dense_out and li == num_layers - 1:
            # keep (out, in); pad out-rows to a sublane multiple (zeros)
            w = jnp.pad(w, ((0, out_rows - w.shape[0]), (0, 0)))
            b = jnp.pad(b, (0, out_rows - b.shape[0])).reshape(out_rows, 1)
        else:
            w = w.T                      # (in, out): MXU-direct
            b = b.reshape(1, -1)
        ops.append((w, b))

    param_bytes = sum(int(w.size + b.size) * 4 for w, b in ops)
    flops_per_row = 2 * sum(int(w.size) for w, _ in ops)
    trans_per_row = sum(int(params[i][0].shape[0])
                        for i in range(num_layers)
                        if i < len(activations) and activations[i] == "tanh")

    def forward(x):
        batch = x.shape[0]
        assert x.shape[1] == in_features
        tb, batch_padded, chunk = _pick_batch_tiling(
            batch, max_batch_tile, lane_dense_out)
        n_chunks = tb // chunk
        grid = (batch_padded // tb,)

        xp = x.astype(jnp.float32)
        if batch_padded != batch:
            xp = jnp.pad(xp, ((0, batch_padded - batch), (0, 0)))

        kernel = _make_fused_mlp_kernel(num_layers, activations, chunk,
                                        n_chunks, lane_dense_out)

        in_specs = [pl.BlockSpec((tb, in_features), lambda i: (i, 0))]
        operands = [xp]
        for w, b in ops:
            in_specs.append(pl.BlockSpec(w.shape, lambda i: (0, 0)))
            in_specs.append(pl.BlockSpec(b.shape, lambda i: (0, 0)))
            operands.append(w)
            operands.append(b)

        if lane_dense_out:
            out_shape = jax.ShapeDtypeStruct((out_rows, batch_padded),
                                             jnp.float32)
            out_spec = pl.BlockSpec((out_rows, tb), lambda i: (0, i))
            out_tile_bytes = out_rows * tb * 4
            out_hbm_bytes = out_rows * batch_padded * 4
        else:
            out_shape = jax.ShapeDtypeStruct((batch_padded, out_features),
                                             jnp.float32)
            out_spec = pl.BlockSpec((tb, out_features), lambda i: (i, 0))
            out_tile_bytes = tb * out_features * 4
            out_hbm_bytes = batch_padded * out_features * 4

        x_tile_bytes = tb * in_features * 4
        cost = pl.CostEstimate(
            flops=flops_per_row * batch_padded,
            transcendentals=trans_per_row * batch_padded,
            bytes_accessed=(batch_padded * in_features * 4
                            + out_hbm_bytes + param_bytes))

        # Explicit VMEM budget once tiles grow (double-buffered x + out tiles,
        # resident params, headroom); stays under v7x's 64 MiB physical VMEM.
        vmem_needed = 4 * (x_tile_bytes + out_tile_bytes) + 2 * param_bytes + (4 << 20)
        vmem_limit = (min(_round_up(vmem_needed, 1 << 20), 64 << 20)
                      if vmem_needed > (12 << 20) else None)
        compiler_params = pltpu.CompilerParams(
            dimension_semantics=("parallel",),
            vmem_limit_bytes=vmem_limit)

        out = pl.pallas_call(
            kernel,
            out_shape=out_shape,
            grid=grid,
            in_specs=in_specs,
            out_specs=out_spec,
            compiler_params=compiler_params,
            cost_estimate=cost,
        )(*operands)

        if lane_dense_out:
            return out[:out_features, :batch].T
        return out[:batch, :]

    return jax.jit(forward)


def net_forward(x, params, activation_functions, *, max_batch_tile=4096):
    """One-off convenience wrapper (prefer make_net_forward for repeated use)."""
    fwd = make_net_forward(params, activation_functions,
                           max_batch_tile=max_batch_tile)
    return fwd(x)


def init_params(layers, key):
    """PyTorch nn.Linear default init: W (out, in), b (out,), both
    uniform(-1/sqrt(in), 1/sqrt(in))."""
    params = []
    for i in range(len(layers) - 1):
        fan_in, fan_out = layers[i], layers[i + 1]
        key, kw, kb = jax.random.split(key, 3)
        bound = 1.0 / jnp.sqrt(jnp.float32(fan_in))
        w = jax.random.uniform(
            kw, (fan_out, fan_in), jnp.float32, minval=-bound, maxval=bound)
        b = jax.random.uniform(
            kb, (fan_out,), jnp.float32, minval=-bound, maxval=bound)
        params.append((w, b))
    return params


def _reference_forward(x, params, activation_functions):
    """Pure-jnp reference of Net.forward (correctness check)."""
    h = x
    for i, (w, b) in enumerate(params):
        h = h @ w.T + b
        act = activation_functions[i] if i < len(activation_functions) else None
        if act == "relu":
            h = jnp.maximum(h, 0.0)
        elif act == "tanh":
            h = jnp.tanh(h)
    return h


if __name__ == "__main__":
    # Small MLP-for-regression: layers=[32, 64, 64, 1],
    # activation_functions=[ReLU, Tanh]  (last Linear has no activation).
    layers = [32, 64, 64, 1]
    activation_functions = ["relu", "tanh"]

    key = jax.random.PRNGKey(0)
    key, kx = jax.random.split(key)
    batch = 8
    x = jax.random.normal(kx, (batch, layers[0]), dtype=jnp.float32)

    params = init_params(layers, key)

    fwd = make_net_forward(params, activation_functions)
    out = jax.block_until_ready(fwd(x))
    assert out.shape == (batch, layers[-1]), out.shape

    ref = _reference_forward(x, params, activation_functions)
    assert jnp.allclose(out, ref, atol=1e-5, rtol=1e-5), (
        float(jnp.max(jnp.abs(out - ref))))

    # Also exercise a multi-tile grid (even #steps -> both v7x TCs used).
    key, kx2 = jax.random.split(key)
    x2 = jax.random.normal(kx2, (600, layers[0]), dtype=jnp.float32)
    out2 = jax.block_until_ready(fwd(x2))
    ref2 = _reference_forward(x2, params, activation_functions)
    assert out2.shape == (600, layers[-1]), out2.shape
    assert jnp.allclose(out2, ref2, atol=1e-5, rtol=1e-5), (
        float(jnp.max(jnp.abs(out2 - ref2))))

    print("KERNEL_OK")
</pallas_src>

<mosaic_0001>
module attributes {stable_mosaic.version = 11 : i64} {
  func.func @kernel(%arg0: i32, %arg1: memref<128x32xf32, #tpu.memory_space<vmem>>, %arg2: memref<32x64xf32, #tpu.memory_space<vmem>>, %arg3: memref<1x64xf32, #tpu.memory_space<vmem>>, %arg4: memref<64x64xf32, #tpu.memory_space<vmem>>, %arg5: memref<1x64xf32, #tpu.memory_space<vmem>>, %arg6: memref<8x64xf32, #tpu.memory_space<vmem>>, %arg7: memref<8x1xf32, #tpu.memory_space<vmem>>, %arg8: memref<8x128xf32, #tpu.memory_space<vmem>>) attributes {dimension_semantics = [#tpu.dimension_semantics<parallel>], iteration_bounds = array<i64: 1>, scalar_prefetch = 0 : i64, scratch_operands = 0 : i64, tpu.core_type = #tpu.core_type<tc>, window_params = [{transform_indices = @transform_0, window_bounds = array<i64: 128, 32>}, {pipeline_mode = #tpu.pipeline_mode<synchronous>, transform_indices = @transform_1, window_bounds = array<i64: 32, 64>}, {pipeline_mode = #tpu.pipeline_mode<synchronous>, transform_indices = @transform_2, window_bounds = array<i64: 1, 64>}, {pipeline_mode = #tpu.pipeline_mode<synchronous>, transform_indices = @transform_3, window_bounds = array<i64: 64, 64>}, {pipeline_mode = #tpu.pipeline_mode<synchronous>, transform_indices = @transform_4, window_bounds = array<i64: 1, 64>}, {pipeline_mode = #tpu.pipeline_mode<synchronous>, transform_indices = @transform_5, window_bounds = array<i64: 8, 64>}, {pipeline_mode = #tpu.pipeline_mode<synchronous>, transform_indices = @transform_6, window_bounds = array<i64: 8, 1>}, {transform_indices = @transform_7, window_bounds = array<i64: 8, 128>}]} {
    %c0_i32 = arith.constant 0 : i32
    %c128_i32 = arith.constant 128 : i32
    %0 = arith.muli %c0_i32, %c128_i32 : i32
    %1 = tpu.assume_multiple %0, 128 : i32
    %2 = arith.index_cast %1 : i32 to index
    %c0 = arith.constant 0 : index
    %3 = vector.load %arg1[%2, %c0] : memref<128x32xf32, #tpu.memory_space<vmem>>, vector<128x32xf32>
    %c0_0 = arith.constant 0 : index
    %c0_1 = arith.constant 0 : index
    %4 = vector.load %arg2[%c0_0, %c0_1] : memref<32x64xf32, #tpu.memory_space<vmem>>, vector<32x64xf32>
    %c0_2 = arith.constant 0 : index
    %c0_3 = arith.constant 0 : index
    %5 = vector.load %arg3[%c0_2, %c0_3] : memref<1x64xf32, #tpu.memory_space<vmem>>, vector<1x64xf32>
    %cst = arith.constant dense<0.000000e+00> : vector<128x64xf32>
    %6 = tpu.matmul %3, %4, %cst {dimension_numbers = #tpu.dot_dimension_numbers<[1], [0], [0], [1], [0, 0, 1, 1], [], []>} : vector<128x32xf32>, vector<32x64xf32>, vector<128x64xf32> -> vector<128x64xf32>
    %7 = vector.broadcast %5 : vector<1x64xf32> to vector<128x64xf32>
    %8 = arith.addf %6, %7 : vector<128x64xf32>
    %cst_4 = arith.constant 0.000000e+00 : f32
    %9 = vector.broadcast %cst_4 : f32 to vector<128x64xf32>
    %10 = arith.maximumf %8, %9 : vector<128x64xf32>
    %c0_5 = arith.constant 0 : index
    %c0_6 = arith.constant 0 : index
    %11 = vector.load %arg4[%c0_5, %c0_6] : memref<64x64xf32, #tpu.memory_space<vmem>>, vector<64x64xf32>
    %c0_7 = arith.constant 0 : index
    %c0_8 = arith.constant 0 : index
    %12 = vector.load %arg5[%c0_7, %c0_8] : memref<1x64xf32, #tpu.memory_space<vmem>>, vector<1x64xf32>
    %cst_9 = arith.constant dense<0.000000e+00> : vector<128x64xf32>
    %13 = tpu.matmul %10, %11, %cst_9 {dimension_numbers = #tpu.dot_dimension_numbers<[1], [0], [0], [1], [0, 0, 1, 1], [], []>} : vector<128x64xf32>, vector<64x64xf32>, vector<128x64xf32> -> vector<128x64xf32>
    %14 = vector.broadcast %12 : vector<1x64xf32> to vector<128x64xf32>
    %15 = arith.addf %13, %14 : vector<128x64xf32>
    %16 = math.tanh %15 : vector<128x64xf32>
    %c0_10 = arith.constant 0 : index
    %c0_11 = arith.constant 0 : index
    %17 = vector.load %arg6[%c0_10, %c0_11] : memref<8x64xf32, #tpu.memory_space<vmem>>, vector<8x64xf32>
    %c0_12 = arith.constant 0 : index
    %c0_13 = arith.constant 0 : index
    %18 = vector.load %arg7[%c0_12, %c0_13] : memref<8x1xf32, #tpu.memory_space<vmem>>, vector<8x1xf32>
    %cst_14 = arith.constant dense<0.000000e+00> : vector<8x128xf32>
    %19 = tpu.matmul %17, %16, %cst_14 {dimension_numbers = #tpu.dot_dimension_numbers<[1], [1], [0], [0], [0, 0, 1, 0], [], []>} : vector<8x64xf32>, vector<128x64xf32>, vector<8x128xf32> -> vector<8x128xf32>
    %20 = vector.broadcast %18 : vector<8x1xf32> to vector<8x128xf32>
    %21 = arith.addf %19, %20 : vector<8x128xf32>
    %c0_15 = arith.constant 0 : index
    %22 = arith.index_cast %1 : i32 to index
    %23 = vector.load %arg8[%c0_15, %22] : memref<8x128xf32, #tpu.memory_space<vmem>>, vector<8x128xf32>
    tpu.vector_store %arg8[%c0_15, %22], %21 {strides = array<i32>} : memref<8x128xf32, #tpu.memory_space<vmem>>, vector<8x128xf32>,
    %c1_i32 = arith.constant 1 : i32
    return
  }
  func.func @transform_0(%arg0: i32) -> (i32, i32) {
    %c0_i32 = arith.constant 0 : i32
    %c0_i32_0 = arith.constant 0 : i32
    return %arg0, %c0_i32 : i32, i32
  }
  func.func @transform_1(%arg0: i32) -> (i32, i32) {
    %c0_i32 = arith.constant 0 : i32
    %c0_i32_0 = arith.constant 0 : i32
    %c0_i32_1 = arith.constant 0 : i32
    return %c0_i32, %c0_i32_0 : i32, i32
  }
  func.func @transform_2(%arg0: i32) -> (i32, i32) {
    %c0_i32 = arith.constant 0 : i32
    %c0_i32_0 = arith.constant 0 : i32
    %c0_i32_1 = arith.constant 0 : i32
    return %c0_i32, %c0_i32_0 : i32, i32
  }
  func.func @transform_3(%arg0: i32) -> (i32, i32) {
    %c0_i32 = arith.constant 0 : i32
    %c0_i32_0 = arith.constant 0 : i32
    %c0_i32_1 = arith.constant 0 : i32
    return %c0_i32, %c0_i32_0 : i32, i32
  }
  func.func @transform_4(%arg0: i32) -> (i32, i32) {
    %c0_i32 = arith.constant 0 : i32
    %c0_i32_0 = arith.constant 0 : i32
    %c0_i32_1 = arith.constant 0 : i32
    return %c0_i32, %c0_i32_0 : i32, i32
  }
  func.func @transform_5(%arg0: i32) -> (i32, i32) {
    %c0_i32 = arith.constant 0 : i32
    %c0_i32_0 = arith.constant 0 : i32
    %c0_i32_1 = arith.constant 0 : i32
    return %c0_i32, %c0_i32_0 : i32, i32
  }
  func.func @transform_6(%arg0: i32) -> (i32, i32) {
    %c0_i32 = arith.constant 0 : i32
    %c0_i32_0 = arith.constant 0 : i32
    %c0_i32_1 = arith.constant 0 : i32
    return %c0_i32, %c0_i32_0 : i32, i32
  }
  func.func @transform_7(%arg0: i32) -> (i32, i32) {
    %c0_i32 = arith.constant 0 : i32
    %c0_i32_0 = arith.constant 0 : i32
    return %c0_i32, %arg0 : i32, i32
  }
}

</mosaic_0001>

<bundles_post_ra>
// kernel: forward.1
= control target key start
LH: loop header
LB: loop body
LE: loop exit
PB: predicated region body
PF: predicated region fallthrough
CT: control target
= control target key end

     0   :  { %vm53_vm0 = vcmask 261120   ;;  %vm278_vm1 = vcmask 523264   ;;  %vm934_vm2 = vmmov 0   ;;  %s1157_s1 = inlined_call_operand.vmem [shape: f32[32,64], index: 1, kind: input, shape index: {}]   ;;  %s1158_s0 = inlined_call_operand.vmem [shape: f32[128,32], index: 0, kind: input, shape index: {}]   ;;  %s1159_s3 = inlined_call_operand.vmem [shape: f32[64,64], index: 3, kind: input, shape index: {}]   ;;  %s1160_s2 = inlined_call_operand.vmem [shape: f32[1,64], index: 2, kind: input, shape index: {}]   ;;  %s1161_s6 = inlined_call_operand.vmem [shape: f32[8,1], index: 6, kind: input, shape index: {}]   ;;  %s1162_s4 = inlined_call_operand.vmem [shape: f32[1,64], index: 4, kind: input, shape index: {}]   ;;  %s1163_s5 = inlined_call_operand.vmem [shape: f32[8,64], index: 5, kind: input, shape index: {}]   ;;  %s1164_s7 = inlined_call_operand.vmem [shape: f32[8,128], index: 7, kind: output, shape index: {}]  }
   0x1   :  { %v42_v0 = vld [vmem:[%s1157_s1] sm:$0xff]  ;;  %v43_v1 = vld [vmem:[%s1157_s1 + $0x8] sm:$0xff]  ;;  %v44_v2 = vld [vmem:[%s1157_s1 + $0x10] sm:$0xff] }
   0x2   :  { %v840_v3 = vpack.c.bf16 %v43_v1, %v42_v0  ;;  %v45_v4 = vld [vmem:[%s1157_s1 + $0x18] sm:$0xff]  ;;  %v26_v5 = vld [vmem:[%s1158_s0] sm:$0xff]  ;;  %v264_v8 = vld [vmem:[%s1159_s3 + $0x8] sm:$0xff] }
   0x3   :  { %v844_v6 = vpack.c.bf16 %v45_v4, %v44_v2  ;;  %741 = vmatprep.mubr.msk.f32.mxu1 %vm53_vm0, %v26_v5  ;;  %v263_v7 = vld [vmem:[%s1159_s3] sm:$0xff]  ;;  %v265_v9 = vld [vmem:[%s1159_s3 + $0x10] sm:$0xff]  ;;  %v266_v10 = vld [vmem:[%s1159_s3 + $0x18] sm:$0xff] }
   0x4   :  { %841 = vmatprep.subr.bf16.mxu1 %v840_v3  ;;  %v27_v11 = vld [vmem:[%s1158_s0 + $0x8] sm:$0xff]  ;;  %v848_v12 = vpack.c.bf16 %v264_v8, %v263_v7  ;;  %v28_v13 = vld [vmem:[%s1158_s0 + $0x10] sm:$0xff]  ;;  %v852_v14 = vpack.c.bf16 %v266_v10, %v265_v9  ;;  %v267_v15 = vld [vmem:[%s1159_s3 + $0x20] sm:$0xff] }
   0x5   :  { %843 = vmatpush3.bf16.msra.mxu1 %v840_v3  ;;  %v268_v16 = vld [vmem:[%s1159_s3 + $0x28] sm:$0xff]  ;;  %v29_v17 = vld [vmem:[%s1158_s0 + $0x18] sm:$0xff]  ;;  %v30_v18 = vld [vmem:[%s1158_s0 + $0x20] sm:$0xff] }
   0x6   :  { %845 = vmatprep.subr.bf16.mxu1 %v844_v6  ;;  %v856_v19 = vpack.c.bf16 %v268_v16, %v267_v15  ;;  %v269_v20 = vld [vmem:[%s1159_s3 + $0x30] sm:$0xff]  ;;  %v270_v21 = vld [vmem:[%s1159_s3 + $0x38] sm:$0xff]  ;;  %v31_v22 = vld [vmem:[%s1158_s0 + $0x28] sm:$0xff] }
   0x7   :  { %v32_v23 = vld [vmem:[%s1158_s0 + $0x30] sm:$0xff]  ;;  %v860_v24 = vpack.c.bf16 %v270_v21, %v269_v20  ;;  %v33_v25 = vld [vmem:[%s1158_s0 + $0x38] sm:$0xff]  ;;  %v34_v26 = vld [vmem:[%s1158_s0 + $0x40] sm:$0xff]  ;;  %v935_v20 = vmov 0.0   ;;  %v936_v21 = vmov 0  }
   0x8   :  { %v35_v27 = vld [vmem:[%s1158_s0 + $0x48] sm:$0xff]  ;;  %v36_v28 = vld [vmem:[%s1158_s0 + $0x50] sm:$0xff]  ;;  %v37_v29 = vld [vmem:[%s1158_s0 + $0x58] sm:$0xff]  ;;  %837 = vmatprep.mubr.msk.f32.mxu0 %vm934_vm2, %v935_v20  ;;  %900 = vset.pattern.permute.xlu0 %v936_v21 }
   0x9   :  { %847 = vmatpush3.bf16.msra.mxu1 %v844_v6  ;;  %v38_v30 = vld [vmem:[%s1158_s0 + $0x60] sm:$0xff]  ;;  %v39_v31 = vld [vmem:[%s1158_s0 + $0x68] sm:$0xff]  ;;  %v40_v32 = vld [vmem:[%s1158_s0 + $0x70] sm:$0xff] }
   0xa   :  { %849 = vmatprep.subr.bf16.mxu1 %v848_v12  ;;  %v41_v33 = vld [vmem:[%s1158_s0 + $0x78] sm:$0xff]  ;;  %v621_v34 = vld [vmem:[%s1160_s2] ss:$0 sm:$0xff]  ;;  %vm1114_vm3 = vmpackc.low %vm278_vm1, %vm278_vm1 }
   0xc   :  { %742 = vmatmul.mubr.msk.f32.vlgmr.msra.gmra.mrb[0].mxu1 %vm53_vm0, %v27_v11 }
   0xd   :  { %744 = vmatprep.mubr.msk.f32.mxu1 %vm53_vm0, %v28_v13  ;;  %851 = vmatpush3.bf16.msra.mxu1 %v848_v12 }
   0xe   :  { %853 = vmatprep.subr.bf16.mxu1 %v852_v14 }
  0x10   :  { %745 = vmatmul.mubr.msk.f32.gmra.mrb[2].mxu1 %vm53_vm0, %v29_v17 }
  0x11   :  { %747 = vmatprep.mubr.msk.f32.mxu1 %vm53_vm0, %v30_v18  ;;  %855 = vmatpush3.bf16.msra.mxu1 %v852_v14 }
  0x12   :  { %857 = vmatprep.subr.bf16.mxu1 %v856_v19 }
  0x14   :  { %748 = vmatmul.mubr.msk.f32.gmra.mrb[4].mxu1 %vm53_vm0, %v31_v22  ;;  %v489_v22 = vld [vmem:[%s1161_s6] sm:$0xff] }
  0x15   :  { %750 = vmatprep.mubr.msk.f32.mxu1 %vm53_vm0, %v32_v23  ;;  %859 = vmatpush3.bf16.msra.mxu1 %v856_v19  ;;  %v933_v19 = vmov 0.0|0.0   ;;  %v1103_v23 = vld [vmem:[%s1162_s4] ss:$0 sm:$0xff] }
  0x16   :  { %861 = vmatprep.subr.bf16.mxu1 %v860_v24  ;;  %864 = vmatprep.subr.bf16.mxu0 %v933_v19 }
  0x17   :  { %492 = vperm.xlu0 %900, %v489_v22  }
  0x18   :  { %751 = vmatmul.mubr.msk.f32.gmra.mrb[6].mxu1 %vm53_vm0, %v33_v25 }
  0x19   :  { %753 = vmatprep.mubr.msk.f32.mxu1 %vm53_vm0, %v34_v26  ;;  %863 = vmatpush3.bf16.msra.mxu1 %v860_v24 }
  0x1c   :  { %754 = vmatmul.mubr.msk.f32.gmra.mrb[8].mxu1 %vm53_vm0, %v35_v27 }
  0x1d   :  { %756 = vmatprep.mubr.msk.f32.mxu1 %vm53_vm0, %v36_v28 }
  0x20   :  { %757 = vmatmul.mubr.msk.f32.gmra.mrb[10].mxu1 %vm53_vm0, %v37_v29 }
  0x21   :  { %759 = vmatprep.mubr.msk.f32.mxu1 %vm53_vm0, %v38_v30 }
  0x24   :  { %760 = vmatmul.mubr.msk.f32.gmra.mrb[12].mxu1 %vm53_vm0, %v39_v31 }
  0x25   :  { %762 = vmatprep.mubr.msk.f32.mxu1 %vm53_vm0, %v40_v32 }
  0x28   :  { %763 = vmatmul.mubr.msk.f32.gmra.mrb[14].mxu1 %vm53_vm0, %v41_v33 }
  0xdf   :  { %v743_v35 = vpop.f32.mrb[0].mxu1 }
  0xe0   :  { %v174_v36 = vadd.f32 %v743_v35, %v621_v34  ;;  %v168_v37 = vpop.f32.mrb[1].mxu1 }
  0xe1   :  { %v169_v38 = vadd.f32 %v621_v34, %v168_v37 }
  0xe2   :  { %v248_v41 = vmax.f32 %v174_v36, 0.0 }
  0xe3   :  { %v247_v39 = vmax.f32 %v169_v38, 0.0  ;;  %v746_v40 = vpop.f32.mrb[2].mxu1 }
  0xe4   :  { %v184_v42 = vadd.f32 %v746_v40, %v621_v34  ;;  %v178_v43 = vpop.f32.mrb[3].mxu1 }
  0xe5   :  { %v179_v44 = vadd.f32 %v621_v34, %v178_v43  ;;  %781 = vmatprep.mubr.msk.f32.mxu1 %vm278_vm1, %v247_v39 }
  0xe6   :  { %v250_v45 = vmax.f32 %v184_v42, 0.0  ;;  %782 = vmatmul.mubr.msk.f32.vlgmr.msra.gmra.mrb[16].mxu1 %vm278_vm1, %v248_v41 }
  0xe7   :  { %v249_v46 = vmax.f32 %v179_v44, 0.0  ;;  %v749_v47 = vpop.f32.mrb[4].mxu1 }
  0xe8   :  { %v194_v48 = vadd.f32 %v749_v47, %v621_v34  ;;  %v188_v49 = vpop.f32.mrb[5].mxu1 }
  0xe9   :  { %784 = vmatprep.mubr.msk.f32.mxu1 %vm278_vm1, %v249_v46  ;;  %v189_v50 = vadd.f32 %v621_v34, %v188_v49 }
  0xea   :  { %785 = vmatmul.mubr.msk.f32.gmra.mrb[18].mxu1 %vm278_vm1, %v250_v45  ;;  %v252_v51 = vmax.f32 %v194_v48, 0.0 }
  0xeb   :  { %v251_v52 = vmax.f32 %v189_v50, 0.0  ;;  %v752_v53 = vpop.f32.mrb[6].mxu1 }
  0xec   :  { %v204_v54 = vadd.f32 %v752_v53, %v621_v34  ;;  %v198_v55 = vpop.f32.mrb[7].mxu1 }
  0xed   :  { %787 = vmatprep.mubr.msk.f32.mxu1 %vm278_vm1, %v251_v52  ;;  %v199_v56 = vadd.f32 %v621_v34, %v198_v55 }
  0xee   :  { %788 = vmatmul.mubr.msk.f32.gmra.mrb[20].mxu1 %vm278_vm1, %v252_v51  ;;  %v254_v57 = vmax.f32 %v204_v54, 0.0 }
  0xef   :  { %v253_v58 = vmax.f32 %v199_v56, 0.0  ;;  %v755_v59 = vpop.f32.mrb[8].mxu1 }
  0xf0   :  { %v214_v60 = vadd.f32 %v755_v59, %v621_v34  ;;  %v208_v61 = vpop.f32.mrb[9].mxu1 }
  0xf1   :  { %790 = vmatprep.mubr.msk.f32.mxu1 %vm278_vm1, %v253_v58  ;;  %v209_v62 = vadd.f32 %v621_v34, %v208_v61 }
  0xf2   :  { %791 = vmatmul.mubr.msk.f32.gmra.mrb[22].mxu1 %vm278_vm1, %v254_v57  ;;  %v256_v63 = vmax.f32 %v214_v60, 0.0 }
  0xf3   :  { %v255_v0 = vmax.f32 %v209_v62, 0.0  ;;  %v758_v1 = vpop.f32.mrb[10].mxu1 }
  0xf4   :  { %v224_v2 = vadd.f32 %v758_v1, %v621_v34  ;;  %v218_v3 = vpop.f32.mrb[11].mxu1 }
  0xf5   :  { %793 = vmatprep.mubr.msk.f32.mxu1 %vm278_vm1, %v255_v0  ;;  %v219_v4 = vadd.f32 %v621_v34, %v218_v3 }
  0xf6   :  { %794 = vmatmul.mubr.msk.f32.gmra.mrb[24].mxu1 %vm278_vm1, %v256_v63  ;;  %v258_v5 = vmax.f32 %v224_v2, 0.0 }
  0xf7   :  { %v257_v6 = vmax.f32 %v219_v4, 0.0  ;;  %v761_v7 = vpop.f32.mrb[12].mxu1 }
  0xf8   :  { %v234_v8 = vadd.f32 %v761_v7, %v621_v34  ;;  %v228_v9 = vpop.f32.mrb[13].mxu1 }
  0xf9   :  { %796 = vmatprep.mubr.msk.f32.mxu1 %vm278_vm1, %v257_v6  ;;  %v229_v10 = vadd.f32 %v621_v34, %v228_v9 }
  0xfa   :  { %797 = vmatmul.mubr.msk.f32.gmra.mrb[26].mxu1 %vm278_vm1, %v258_v5  ;;  %v260_v11 = vmax.f32 %v234_v8, 0.0 }
  0xfb   :  { %v259_v12 = vmax.f32 %v229_v10, 0.0  ;;  %v764_v13 = vpop.f32.mrb[14].mxu1 }
  0xfc   :  { %v244_v14 = vadd.f32 %v764_v13, %v621_v34  ;;  %v238_v15 = vpop.f32.mrb[15].mxu1 }
  0xfd   :  { %799 = vmatprep.mubr.msk.f32.mxu1 %vm278_vm1, %v259_v12  ;;  %v239_v16 = vadd.f32 %v621_v34, %v238_v15 }
  0xfe   :  { %800 = vmatmul.mubr.msk.f32.gmra.mrb[28].mxu1 %vm278_vm1, %v260_v11  ;;  %v262_v17 = vmax.f32 %v244_v14, 0.0 }
  0xff   :  { %v261_v18 = vmax.f32 %v239_v16, 0.0 }
 0x101   :  { %802 = vmatprep.mubr.msk.f32.mxu1 %vm278_vm1, %v261_v18  ;;  %v493_v18 = vpop.permute.xlu0 %492 }
 0x102   :  { %803 = vmatmul.mubr.msk.f32.gmra.mrb[30].mxu1 %vm278_vm1, %v262_v17  ;;  %v488_v17 = vld [vmem:[%s1163_s5] sm:$0xff] }
 0x1b9   :  { %v783_v24 = vpop.f32.mrb[16].mxu1 }
 0x1ba   :  { %v399_v25 = vadd.f32 %v783_v24, %v1103_v23  ;;  %v393_v26 = vpop.f32.mrb[17].mxu1 }
 0x1bb   :  { %v394_v27 = vadd.f32 %v1103_v23, %v393_v26 }
 0x1bc   :  { %901 = vtanh.f32 %v399_v25 }
 0x1bd   :  { %903 = vtanh.f32 %v394_v27  ;;  %v786_v28 = vpop.f32.mrb[18].mxu1 }
 0x1be   :  { %v409_v29 = vadd.f32 %v786_v28, %v1103_v23  ;;  %v403_v30 = vpop.f32.mrb[19].mxu1 }
 0x1bf   :  { %v404_v31 = vadd.f32 %v1103_v23, %v403_v30 }
 0x1c0   :  { %905 = vtanh.f32 %v409_v29 }
 0x1c1   :  { %907 = vtanh.f32 %v404_v31  ;;  %v789_v32 = vpop.f32.mrb[20].mxu1 }
 0x1c2   :  { %v419_v33 = vadd.f32 %v789_v32, %v1103_v23  ;;  %v413_v34 = vpop.f32.mrb[21].mxu1 }
 0x1c3   :  { %v414_v35 = vadd.f32 %v1103_v23, %v413_v34 }
 0x1c4   :  { %909 = vtanh.f32 %v419_v33 }
 0x1c5   :  { %911 = vtanh.f32 %v414_v35  ;;  %v792_v36 = vpop.f32.mrb[22].mxu1 }
 0x1c6   :  { %v902_v37 = vpop.eup %901  ;;  %v429_v38 = vadd.f32 %v792_v36, %v1103_v23  ;;  %v423_v39 = vpop.f32.mrb[23].mxu1 }
 0x1c7   :  { %v904_v40 = vpop.eup %903  ;;  %v424_v42 = vadd.f32 %v1103_v23, %v423_v39 }
 0x1c8   :  { %v865_v43 = vpack.c.bf16 %v902_v37, %v904_v40  ;;  %913 = vtanh.f32 %v429_v38 }
 0x1c9   :  { %915 = vtanh.f32 %v424_v42  ;;  %v795_v44 = vpop.f32.mrb[24].mxu1 }
 0x1ca   :  { %v906_v45 = vpop.eup %905  ;;  %867 = vmatpush3.bf16.xpose.msk.msra.mxu0 %vm1114_vm3, %v865_v43  ;;  %v439_v46 = vadd.f32 %v795_v44, %v1103_v23  ;;  %v433_v47 = vpop.f32.mrb[25].mxu1 }
 0x1cb   :  { %v908_v48 = vpop.eup %907  ;;  %868 = vmatprep.subr.bf16.mxu0 %v933_v19  ;;  %v434_v49 = vadd.f32 %v1103_v23, %v433_v47 }
 0x1cc   :  { %v869_v50 = vpack.c.bf16 %v906_v45, %v908_v48  ;;  %917 = vtanh.f32 %v439_v46 }
 0x1cd   :  { %919 = vtanh.f32 %v434_v49  ;;  %v798_v51 = vpop.f32.mrb[26].mxu1 }
 0x1ce   :  { %v910_v52 = vpop.eup %909  ;;  %v449_v53 = vadd.f32 %v798_v51, %v1103_v23  ;;  %v443_v54 = vpop.f32.mrb[27].mxu1 }
 0x1cf   :  { %v912_v55 = vpop.eup %911  ;;  %v444_v56 = vadd.f32 %v1103_v23, %v443_v54 }
 0x1d0   :  { %v873_v57 = vpack.c.bf16 %v910_v52, %v912_v55  ;;  %921 = vtanh.f32 %v449_v53 }
 0x1d1   :  { %923 = vtanh.f32 %v444_v56  ;;  %v801_v58 = vpop.f32.mrb[28].mxu1 }
 0x1d2   :  { %v914_v59 = vpop.eup %913  ;;  %871 = vmatpush3.bf16.xpose.msk.msra.mxu0 %vm1114_vm3, %v869_v50  ;;  %v459_v60 = vadd.f32 %v801_v58, %v1103_v23  ;;  %v453_v61 = vpop.f32.mrb[29].mxu1 }
 0x1d3   :  { %v916_v62 = vpop.eup %915  ;;  %872 = vmatprep.subr.bf16.mxu0 %v933_v19  ;;  %v454_v63 = vadd.f32 %v1103_v23, %v453_v61 }
 0x1d4   :  { %v877_v0 = vpack.c.bf16 %v914_v59, %v916_v62  ;;  %925 = vtanh.f32 %v459_v60 }
 0x1d5   :  { %927 = vtanh.f32 %v454_v63  ;;  %v804_v1 = vpop.f32.mrb[30].mxu1 }
 0x1d6   :  { %v918_v2 = vpop.eup %917  ;;  %v469_v3 = vadd.f32 %v804_v1, %v1103_v23  ;;  %v463_v4 = vpop.f32.mrb[31].mxu1 }
 0x1d7   :  { %v920_v5 = vpop.eup %919  ;;  %v464_v6 = vadd.f32 %v1103_v23, %v463_v4 }
 0x1d8   :  { %v881_v7 = vpack.c.bf16 %v918_v2, %v920_v5  ;;  %929 = vtanh.f32 %v469_v3 }
 0x1d9   :  { %931 = vtanh.f32 %v464_v6 }
 0x1da   :  { %v922_v8 = vpop.eup %921  ;;  %875 = vmatpush3.bf16.xpose.msk.msra.mxu0 %vm1114_vm3, %v873_v57 }
 0x1db   :  { %v924_v9 = vpop.eup %923  ;;  %876 = vmatprep.subr.bf16.mxu0 %v933_v19 }
 0x1dc   :  { %v885_v10 = vpack.c.bf16 %v922_v8, %v924_v9 }
 0x1de   :  { %v926_v11 = vpop.eup %925 }
 0x1df   :  { %v928_v12 = vpop.eup %927 }
 0x1e0   :  { %v889_v13 = vpack.c.bf16 %v926_v11, %v928_v12 }
 0x1e2   :  { %v930_v14 = vpop.eup %929  ;;  %879 = vmatpush3.bf16.xpose.msk.msra.mxu0 %vm1114_vm3, %v877_v0 }
 0x1e3   :  { %v932_v15 = vpop.eup %931  ;;  %880 = vmatprep.subr.bf16.mxu0 %v933_v19 }
 0x1e4   :  { %v893_v16 = vpack.c.bf16 %v930_v14, %v932_v15 }
 0x1ea   :  { %883 = vmatpush3.bf16.xpose.msk.msra.mxu0 %vm1114_vm3, %v881_v7 }
 0x1eb   :  { %884 = vmatprep.subr.bf16.mxu0 %v933_v19 }
 0x1f2   :  { %887 = vmatpush3.bf16.xpose.msk.msra.mxu0 %vm1114_vm3, %v885_v10 }
 0x1f3   :  { %888 = vmatprep.subr.bf16.mxu0 %v933_v19 }
 0x1fa   :  { %891 = vmatpush3.bf16.xpose.msk.msra.mxu0 %vm1114_vm3, %v889_v13 }
 0x1fb   :  { %892 = vmatprep.subr.bf16.mxu0 %v933_v19 }
 0x202   :  { %895 = vmatpush3.bf16.xpose.msk.msra.mxu0 %vm1114_vm3, %v893_v16 }
 0x209   :  { %838 = vmatmul.mubr.msk.f32.vlgmr.msra.gmra.mrb[0].mxu0 %vm278_vm1, %v488_v17 }
 0x2dc   :  { %v612_v20 = vpop.f32.mrb[0].mxu0 }
 0x2dd   :  { %v613_v21 = vadd.f32 %v612_v20, %v493_v18  ;;  %v839_v22 = vpop.f32.mrb[1].mxu0 }
 0x2df   :  { %616 = vst [vmem:[%s1164_s7] sm:$0xff] %v613_v21 }

</bundles_post_ra>
